<compile_context>
chip_gen: v7x
topology: tpu7x:2x2x1
jax: 0.10.0
libtpu: 0.0.40
codegen_flags: <defaults>
</compile_context>

<pallas_src>
import functools
import math

import jax
import jax.numpy as jnp
from jax.experimental import pallas as pl
from jax.experimental.pallas import tpu as pltpu


def _sdpa_kernel(q_ref, kt_ref, v_ref, *rest, scale, keep_threshold,
                 inv_keep_prob, apply_dropout):
    """One (S, D) attention head per grid step.

    q_ref:  (S, D) bf16
    kt_ref: (D, S) bf16  (key pre-transposed in the wrapper)
    v_ref:  (S, D) bf16
    rest:   (bits_ref, o_ref) when dropout is active, else (o_ref,)
            bits_ref: (S, S) uint32 host-generated random bits
    o_ref:  (S, D) f32
    """
    o_ref = rest[-1]

    # scores = q @ k^T  (bf16 operands, f32 accumulation on the MXU)
    s = jnp.dot(q_ref[...], kt_ref[...], preferred_element_type=jnp.float32)
    if scale != 1.0:            # compile-time Python constant; d_query=1 -> skip
        s = s * scale

    # numerically stable softmax, all elementwise math in f32 (VPU/EUP)
    m = jnp.max(s, axis=-1, keepdims=True)
    e = jnp.exp(s - m)
    denom = jnp.sum(e, axis=-1, keepdims=True)
    inv = pl.reciprocal(denom, approx=True)       # EUP slot, ~free next to exp
    if apply_dropout:
        # fold the 1/(1-p) inverted-dropout rescale into the [S,1] reciprocal
        inv = inv * inv_keep_prob
    p = e * inv

    if apply_dropout:
        bits_ref = rest[0]
        # keep an element iff uniform >= dropout_p  <=>  bits >= p * 2^32
        keep = bits_ref[...] >= jnp.uint32(keep_threshold)
        p = jnp.where(keep, p, 0.0)

    # out = attn @ value  (bf16 operands, f32 accumulation)
    o_ref[...] = jnp.dot(p.astype(v_ref.dtype), v_ref[...],
                         preferred_element_type=jnp.float32).astype(o_ref.dtype)


def sdpa_pallas(query, key, value, *, d_query=1, dropout_p=0.2,
                training=True, rng_key=None):
    """Pallas TPU implementation of Model.forward.

    Accepts [S, D] (as in the module) or batched [B, S, D] inputs; batched
    heads are mapped onto a "parallel" grid axis.
    """
    squeeze = (query.ndim == 2)
    if squeeze:
        query, key, value = query[None], key[None], value[None]
    B, S, D = query.shape
    assert key.shape == (B, S, D) and value.shape == (B, S, D)

    scale = 1.0 / math.sqrt(float(d_query))
    apply_dropout = bool(training) and float(dropout_p) > 0.0

    # bf16 operands for the MXU; accumulation stays f32 inside the kernel.
    q_bf = query.astype(jnp.bfloat16)
    kt_bf = jnp.swapaxes(key, -1, -2).astype(jnp.bfloat16)   # (B, D, S)
    v_bf = value.astype(jnp.bfloat16)

    args = [q_bf, kt_bf, v_bf]
    in_specs = [
        pl.BlockSpec((None, S, D), lambda b: (b, 0, 0)),
        pl.BlockSpec((None, D, S), lambda b: (b, 0, 0)),
        pl.BlockSpec((None, S, D), lambda b: (b, 0, 0)),
    ]

    keep_threshold = 0
    if apply_dropout:
        if rng_key is None:
            rng_key = jax.random.PRNGKey(0)
        # Host-generated random bits: fresh mask per call (per rng_key); avoids
        # in-kernel PRNG primitives so the kernel also runs in interpret mode.
        bits = jax.random.bits(rng_key, (B, S, S), dtype=jnp.uint32)
        args.append(bits)
        in_specs.append(pl.BlockSpec((None, S, S), lambda b: (b, 0, 0)))
        keep_threshold = min(int(float(dropout_p) * 4294967296.0), 4294967295)

    kernel = functools.partial(
        _sdpa_kernel,
        scale=scale,
        keep_threshold=keep_threshold,
        inv_keep_prob=(1.0 / (1.0 - float(dropout_p))) if apply_dropout else 1.0,
        apply_dropout=apply_dropout,
    )

    out = pl.pallas_call(
        kernel,
        out_shape=jax.ShapeDtypeStruct((B, S, D), jnp.float32),
        grid=(B,),
        in_specs=in_specs,
        out_specs=pl.BlockSpec((None, S, D), lambda b: (b, 0, 0)),
        compiler_params=pltpu.CompilerParams(
            dimension_semantics=("parallel",)),
    )(*args)

    return out[0] if squeeze else out


def sdpa_ref(query, key, value, d_query=1):
    """Pure-JAX reference (no dropout), same bf16-operand matmuls as kernel."""
    scale = 1.0 / math.sqrt(float(d_query))
    q = query.astype(jnp.bfloat16)
    k = key.astype(jnp.bfloat16)
    v = value.astype(jnp.bfloat16)
    s = jnp.einsum("...sd,...td->...st", q, k,
                   preferred_element_type=jnp.float32) * scale
    p = jax.nn.softmax(s, axis=-1)
    return jnp.einsum("...st,...td->...sd", p.astype(jnp.bfloat16), v,
                      preferred_element_type=jnp.float32)


if __name__ == "__main__":
    d_query, d_key, d_value = 1, 1, 1
    dropout_p = 0.2

    rng = jax.random.PRNGKey(0)
    kq, kk, kv, kd = jax.random.split(rng, 4)

    # Shapes from the module: query/key/value are (16, 256) float32.
    S, D = 16, 256
    query = jax.random.normal(kq, (S, D), dtype=jnp.float32)
    key = jax.random.normal(kk, (S, D), dtype=jnp.float32)
    value = jax.random.normal(kv, (S, D), dtype=jnp.float32)

    # 1) Eval-mode correctness (dropout is identity), exactly the module shapes.
    out_eval = jax.block_until_ready(
        sdpa_pallas(query, key, value, d_query=d_query,
                    dropout_p=dropout_p, training=False))
    ref = sdpa_ref(query, key, value, d_query=d_query)
    assert out_eval.shape == (S, D)
    assert jnp.allclose(out_eval, ref, atol=3e-2, rtol=3e-2), "mismatch vs ref"

    # 2) Batched heads on the parallel grid axis (eval), checked per head.
    B = 8
    kb0, kb1, kb2 = jax.random.split(jax.random.PRNGKey(1), 3)
    qb = jax.random.normal(kb0, (B, S, D), dtype=jnp.float32)
    kb = jax.random.normal(kb1, (B, S, D), dtype=jnp.float32)
    vb = jax.random.normal(kb2, (B, S, D), dtype=jnp.float32)
    out_b = jax.block_until_ready(
        sdpa_pallas(qb, kb, vb, d_query=d_query, dropout_p=dropout_p,
                    training=False))
    ref_b = sdpa_ref(qb, kb, vb, d_query=d_query)
    assert out_b.shape == (B, S, D)
    assert jnp.allclose(out_b, ref_b, atol=3e-2, rtol=3e-2), "batched mismatch"

    # 3) Training-mode dropout (stochastic mask from the caller-provided key).
    out_drop = jax.block_until_ready(
        sdpa_pallas(qb, kb, vb, d_query=d_query, dropout_p=dropout_p,
                    training=True, rng_key=kd))
    assert out_drop.shape == (B, S, D)
    assert bool(jnp.all(jnp.isfinite(out_drop)))

    print("KERNEL_OK")
</pallas_src>

<mosaic_0001>
module attributes {stable_mosaic.version = 11 : i64} {
  func.func @_sdpa_kernel(%arg0: i32, %arg1: memref<1x16x256xbf16, #tpu.memory_space<vmem>>, %arg2: memref<1x256x16xbf16, #tpu.memory_space<vmem>>, %arg3: memref<1x16x256xbf16, #tpu.memory_space<vmem>>, %arg4: memref<1x16x256xf32, #tpu.memory_space<vmem>>) attributes {dimension_semantics = [#tpu.dimension_semantics<parallel>], iteration_bounds = array<i64: 1>, scalar_prefetch = 0 : i64, scratch_operands = 0 : i64, tpu.core_type = #tpu.core_type<tc>, window_params = [{transform_indices = @transform_0, window_bounds = array<i64: 1, 16, 256>}, {transform_indices = @transform_1, window_bounds = array<i64: 1, 256, 16>}, {transform_indices = @transform_2, window_bounds = array<i64: 1, 16, 256>}, {transform_indices = @transform_3, window_bounds = array<i64: 1, 16, 256>}]} {
    %c0 = arith.constant 0 : index
    %c0_0 = arith.constant 0 : index
    %c0_1 = arith.constant 0 : index
    %0 = vector.load %arg1[%c0, %c0_0, %c0_1] : memref<1x16x256xbf16, #tpu.memory_space<vmem>>, vector<1x16x256xbf16>
    %1 = vector.shape_cast %0 : vector<1x16x256xbf16> to vector<16x256xbf16>
    %c0_2 = arith.constant 0 : index
    %c0_3 = arith.constant 0 : index
    %c0_4 = arith.constant 0 : index
    %2 = vector.load %arg2[%c0_2, %c0_3, %c0_4] : memref<1x256x16xbf16, #tpu.memory_space<vmem>>, vector<1x256x16xbf16>
    %3 = vector.shape_cast %2 : vector<1x256x16xbf16> to vector<256x16xbf16>
    %cst = arith.constant dense<0.000000e+00> : vector<16x16xf32>
    %4 = tpu.matmul %1, %3, %cst {dimension_numbers = #tpu.dot_dimension_numbers<[1], [0], [0], [1], [0, 0, 1, 1], [], []>} : vector<16x256xbf16>, vector<256x16xbf16>, vector<16x16xf32> -> vector<16x16xf32>
    %cst_5 = arith.constant dense<0xFF800000> : vector<16xf32>
    %5 = vector.multi_reduction <maximumf>, %4, %cst_5 [1] : vector<16x16xf32> to vector<16xf32>
    %6 = vector.shape_cast %5 : vector<16xf32> to vector<16x1xf32>
    %7 = vector.broadcast %6 : vector<16x1xf32> to vector<16x16xf32>
    %8 = arith.subf %4, %7 : vector<16x16xf32>
    %9 = math.exp %8 : vector<16x16xf32>
    %cst_6 = arith.constant dense<0.000000e+00> : vector<16xf32>
    %10 = vector.multi_reduction <add>, %9, %cst_6 [1] : vector<16x16xf32> to vector<16xf32>
    %11 = vector.shape_cast %10 : vector<16xf32> to vector<16x1xf32>
    %12 = tpu.reciprocal %11 {approx = true} : vector<16x1xf32> -> vector<16x1xf32>
    %13 = vector.broadcast %12 : vector<16x1xf32> to vector<16x16xf32>
    %14 = arith.mulf %9, %13 : vector<16x16xf32>
    %15 = arith.truncf %14 : vector<16x16xf32> to vector<16x16xbf16>
    %c0_7 = arith.constant 0 : index
    %c0_8 = arith.constant 0 : index
    %c0_9 = arith.constant 0 : index
    %16 = vector.load %arg3[%c0_7, %c0_8, %c0_9] : memref<1x16x256xbf16, #tpu.memory_space<vmem>>, vector<1x16x256xbf16>
    %17 = vector.shape_cast %16 : vector<1x16x256xbf16> to vector<16x256xbf16>
    %cst_10 = arith.constant dense<0.000000e+00> : vector<16x256xf32>
    %18 = tpu.matmul %15, %17, %cst_10 {dimension_numbers = #tpu.dot_dimension_numbers<[1], [0], [0], [1], [0, 0, 1, 1], [], []>} : vector<16x16xbf16>, vector<16x256xbf16>, vector<16x256xf32> -> vector<16x256xf32>
    %c0_11 = arith.constant 0 : index
    %c0_12 = arith.constant 0 : index
    %c0_13 = arith.constant 0 : index
    %19 = vector.load %arg4[%c0_11, %c0_12, %c0_13] : memref<1x16x256xf32, #tpu.memory_space<vmem>>, vector<1x16x256xf32>
    %20 = vector.shape_cast %19 : vector<1x16x256xf32> to vector<16x256xf32>
    %21 = vector.shape_cast %18 : vector<16x256xf32> to vector<1x16x256xf32>
    tpu.vector_store %arg4[%c0_11, %c0_12, %c0_13], %21 {strides = array<i32>} : memref<1x16x256xf32, #tpu.memory_space<vmem>>, vector<1x16x256xf32>,
    return
  }
  func.func @transform_0(%arg0: i32) -> (i32, i32, i32) {
    %c0_i32 = arith.constant 0 : i32
    %c0_i32_0 = arith.constant 0 : i32
    %c0_i32_1 = arith.constant 0 : i32
    return %arg0, %c0_i32, %c0_i32_0 : i32, i32, i32
  }
  func.func @transform_1(%arg0: i32) -> (i32, i32, i32) {
    %c0_i32 = arith.constant 0 : i32
    %c0_i32_0 = arith.constant 0 : i32
    %c0_i32_1 = arith.constant 0 : i32
    return %arg0, %c0_i32, %c0_i32_0 : i32, i32, i32
  }
  func.func @transform_2(%arg0: i32) -> (i32, i32, i32) {
    %c0_i32 = arith.constant 0 : i32
    %c0_i32_0 = arith.constant 0 : i32
    %c0_i32_1 = arith.constant 0 : i32
    return %arg0, %c0_i32, %c0_i32_0 : i32, i32, i32
  }
  func.func @transform_3(%arg0: i32) -> (i32, i32, i32) {
    %c0_i32 = arith.constant 0 : i32
    %c0_i32_0 = arith.constant 0 : i32
    %c0_i32_1 = arith.constant 0 : i32
    return %arg0, %c0_i32, %c0_i32_0 : i32, i32, i32
  }
}

</mosaic_0001>

<bundles_post_ra>
// kernel: tpu_custom_call.1
= control target key start
LH: loop header
LB: loop body
LE: loop exit
PB: predicated region body
PF: predicated region fallthrough
CT: control target
= control target key end

     0   :  { %s501_s0 = inlined_call_operand.vmem [shape: bf16[1,16,256], index: 0, kind: input, shape index: {}]   ;;  %s502_s1 = inlined_call_operand.vmem [shape: bf16[1,256,16], index: 1, kind: input, shape index: {}]   ;;  %s503_s2 = inlined_call_operand.vmem [shape: bf16[1,16,256], index: 2, kind: input, shape index: {}]   ;;  %s504_s3 = inlined_call_operand.hbm [shape: f32[1,16,256], index: 3, kind: output, shape index: {}]  }
   0x1   :  { %v346_v0 = vld [vmem:[%s502_s1 + $0x40] sm:$0xff]   ;;  %v348_v2 = vld [vmem:[%s502_s1 + $0x48] sm:$0xff]   ;;  %v350_v4 = vld [vmem:[%s502_s1 + $0x50] sm:$0xff]  }
   0x2   :  { %v347_v1 = vld [vmem:[%s502_s1] sm:$0xff]   ;;  %320 = vmatprep.subr.bf16.mxu0 %v346_v0  ;;  %v349_v3 = vld [vmem:[%s502_s1 + $0x8] sm:$0xff]   ;;  %v351_v5 = vld [vmem:[%s502_s1 + $0x10] sm:$0xff]  }
   0x3   :  { %321 = vmatpush3.bf16.msra.mxu0 %v347_v1  ;;  %v352_v6 = vld [vmem:[%s502_s1 + $0x58] sm:$0xff]   ;;  %v354_v8 = vld [vmem:[%s502_s1 + $0x60] sm:$0xff]   ;;  %v356_v10 = vld [vmem:[%s502_s1 + $0x68] sm:$0xff]  }
   0x4   :  { %322 = vmatprep.subr.bf16.mxu0 %v348_v2  ;;  %v353_v7 = vld [vmem:[%s502_s1 + $0x18] sm:$0xff]   ;;  %v355_v9 = vld [vmem:[%s502_s1 + $0x20] sm:$0xff]  }
   0x5   :  { %v364_v11 = vld [vmem:[%s501_s0 + $0x4] ss:$8 sps:$4 sm:$0xff]  }
   0x7   :  { %323 = vmatpush3.bf16.msra.mxu0 %v349_v3 }
   0x8   :  { %324 = vmatprep.subr.bf16.mxu0 %v350_v4 }
   0xb   :  { %325 = vmatpush3.bf16.msra.mxu0 %v351_v5 }
   0xc   :  { %326 = vmatprep.subr.bf16.mxu0 %v352_v6 }
   0xf   :  { %327 = vmatpush3.bf16.msra.mxu0 %v353_v7 }
  0x10   :  { %328 = vmatprep.subr.bf16.mxu0 %v354_v8 }
  0x11   :  { %8 = vsyncpa [#allocation3], 0  ;;  %v357_v12 = vld [vmem:[%s502_s1 + $0x28] sm:$0xff]   ;;  %188 = vmatprep.mubr.bf16.mxu0 %v364_v11  ;;  %v358_v13 = vld [vmem:[%s502_s1 + $0x70] sm:$0xff]   ;;  %vm197_vm0 = vcmask 130048   ;;  %v400_v38 = vmov 0  }
  0x12   :  { %v359_v14 = vld [vmem:[%s502_s1 + $0x30] sm:$0xff]   ;;  %v360_v15 = vld [vmem:[%s502_s1 + $0x78] sm:$0xff]   ;;  %v362_v17 = vld [vmem:[%s501_s0] ss:$8 sps:$4 sm:$0xff]   ;;  %268 = vmatprep.mubr.bf16.mxu1 %v400_v38  ;;  %s401_s23 = smov [#allocation2]  }
  0x13   :  { %329 = vmatpush3.bf16.msra.mxu0 %v355_v9  ;;  %v361_v16 = vld [vmem:[%s502_s1 + $0x38] sm:$0xff]   ;;  %v365_v36 = vld [vmem:[%s503_s2 + $0x4] ss:$8 sps:$4 sm:$0xff]   ;;  %v367_v37 = vld [vmem:[%s503_s2] ss:$8 sps:$4 sm:$0xff]   ;;  %s288_s24 = sshll.u32 %s401_s23, 4  ;;  %s289_s24 = int_to_ptr.vmem [resolvable:$true] %s288_s24 }
  0x14   :  { %330 = vmatprep.subr.bf16.mxu0 %v356_v10  ;;  %236 = vmatprep.subr.bf16.mxu1 %v365_v36  ;;  %s376_s2 = scalar_lea.vmem %s289_s24, 512  ;;  %p381_p1 = scmp.lt.s32.totalorder %s289_s24, %s289_s24 }
  0x15   :  { %237 = vmatpush1.bf16.msra.mxu1 %v367_v37  ;;  %p377_p0 = scmp.ne.s32.totalorder %s289_s24, %s376_s2  ;;  %p382_p2 = scmp.lt.s32.totalorder %s376_s2, %s376_s2 }
  0x17   :  { %331 = vmatpush3.bf16.msra.mxu0 %v357_v12  ;;  %p383_p3 = por %p382_p2, %p381_p1 }
  0x18   :  { %332 = vmatprep.subr.bf16.mxu0 %v358_v13 }
  0x19   :  { %p384_p4 = pnand %p383_p3, %p377_p0 }
  0x1b   :  { %333 = vmatpush3.bf16.msra.mxu0 %v359_v14 }
  0x1c   :  { %334 = vmatprep.subr.bf16.mxu0 %v360_v15 }
  0x1f   :  { %335 = vmatpush3.bf16.msra.mxu0 %v361_v16 }
  0x22   :  { %189 = vmatmul.mubr.bf16.vlgmr.msra.gmra.mrb[0].mxu0 %v362_v17 }
  0xf5   :  { %v336_v18 = vpop.f32.mrb[0].mxu0 }
  0xf6   :  { %v337_v19 = vpop.f32.mrb[1].mxu0 }
  0xf7   :  { %v338_v20 = vadd.f32 %v337_v19, %v336_v18  ;;  %v339_v21 = vpop.f32.mrb[2].mxu0 }
  0xf8   :  { %v340_v22 = vpop.f32.mrb[3].mxu0 }
  0xf9   :  { %v341_v23 = vadd.f32 %v340_v22, %v339_v21  ;;  %v198_v24 = vsel %vm197_vm0, %v338_v20, -inf }
  0xfa   :  { %199 = vmax.xlane.f32.xlu0 %v198_v24 }
  0xfb   :  { %v201_v25 = vsel %vm197_vm0, %v341_v23, -inf }
  0xfe   :  { %202 = vmax.xlane.f32.xlu0 %v201_v25 }
 0x187   :  { %v200_v26 = vpop.xlane.xlu0 %199 }
 0x188   :  { %v204_v27 = vsub.f32 %v338_v20, %v200_v26 }
 0x18a   :  { %v206_v28 = vmul.f32 1.442695, %v204_v27 }
 0x18b   :  { %v203_v29 = vpop.xlane.xlu0 %202 }
 0x18c   :  { %368 = vpow2.f32 %v206_v28  ;;  %v205_v30 = vsub.f32 %v341_v23, %v203_v29 }
 0x18e   :  { %v208_v31 = vmul.f32 1.442695, %v205_v30 }
 0x190   :  { %370 = vpow2.f32 %v208_v31 }
 0x196   :  { %v369_v32 = vpop.eup %368 }
 0x197   :  { %v210_v33 = vsel %vm197_vm0, %v369_v32, 0.0 }
 0x198   :  { %211 = vadd.xlane.f32.xlu1 %v210_v33 }
 0x19a   :  { %v371_v34 = vpop.eup %370 }
 0x19b   :  { %v213_v35 = vsel %vm197_vm0, %v371_v34, 0.0 }
 0x19c   :  { %214 = vadd.xlane.f32.xlu1 %v213_v35 }
 0x225   :  { %v212_v39 = vpop.xlane.xlu1 %211 }
 0x226   :  { %372 = vrcp.f32 %v212_v39 }
 0x229   :  { %v215_v40 = vpop.xlane.xlu1 %214 }
 0x22a   :  { %374 = vrcp.f32 %v215_v40 }
 0x230   :  { %v373_v41 = vpop.eup %372 }
 0x231   :  { %v218_v43 = vmul.f32 %v373_v41, %v369_v32 }
 0x234   :  { %v375_v42 = vpop.eup %374 }
 0x235   :  { %v219_v44 = vmul.f32 %v375_v42, %v371_v34 }
 0x237   :  { %v220_v45 = vpack.c.bf16 %v219_v44, %v218_v43 }
 0x239   :  { %319 = vmatmul.mubr.msk.bf16.vlgmr.msra.gmra.mrb[0].mxu1 %vm197_vm0, %v220_v45 }
 0x30c   :  { %v270_v46 = vpop.f32.mrb[0].mxu1 }
 0x30d   :  { %279 = vst [vmem:[#allocation2] sm:$0xff] %v270_v46  ;;  %v272_v47 = vpop.f32.mrb[1].mxu1 }
 0x30e   :  { %280 = vst [vmem:[#allocation2 + $0x8] sm:$0xff] %v272_v47  ;;  %v274_v48 = vpop.f32.mrb[2].mxu1 }
 0x30f   :  { %281 = vst [vmem:[#allocation2 + $0x10] sm:$0xff] %v274_v48  ;;  %v276_v49 = vpop.f32.mrb[3].mxu1 }
 0x310   :  { %282 = vst [vmem:[#allocation2 + $0x18] sm:$0xff] %v276_v49 }
 0x311   :  { %387 = shalt.err (!%p384_p4)
}
 0x312   :  { %s388_s27 = scalar_lea.hbm %s504_s3, 512 }
 0x313   :  { %p389_p5 = scmp.ne.s32.totalorder %s504_s3, %s388_s27  ;;  %p392_p6 = scmp.lt.u32.totalorder %s388_s27, %s504_s3 }
 0x315   :  { %p394_p7 = pnand %p392_p6, %p389_p5 }
 0x317   :  { %397 = shalt.err (!%p394_p7)
}
 0x318   :  { %s402_s5 = smov 256   ;;  %s403_s6 = smov 16  }
 0x319   :  { %294 = dma.vmem_to_hbm [thread:$0]  %s289_s24, 512, %s504_s3, [#allocation3], %s402_s5, %s402_s5, %s403_s6  }
 0x31a   :  { %398 = dma.done.wait [#allocation3], 512  }
 0x31b   :  { %399 = vsyncadd [#allocation3], 4294966784 }
 0x31c   :  { %298 = vsyncpa [#allocation3], 1 }

</bundles_post_ra>
